<compile_context>
chip_gen: v6e
topology: v6e:2x2x1
jax: 0.10.0
libtpu: 0.0.40
codegen_flags: <defaults>
</compile_context>

<pallas_src>
import jax
import jax.numpy as jnp
import numpy as np
from jax.experimental import pallas as pl
from jax.experimental.pallas import tpu as pltpu


def _round_up(x, m):
    return ((x + m - 1) // m) * m


def _largest_divisor_tile(total, cap, unit):
    """Largest multiple of `unit` that divides `total` (itself a multiple of
    `unit`) and is <= cap."""
    t = min(total, max(unit, (cap // unit) * unit))
    while t > unit and total % t != 0:
        t -= unit
    return t


def lr_matmul_sigmoid_kernel(x_ref, w_ref, o_ref):
    # x_ref : (tb, tk) bf16 input rows         (batch tile, word tile)
    # w_ref : (tn, tk) bf16 fc weight tile     (code tile, word tile) -- PyTorch (out,in) layout
    # o_ref : (tb, tn) f32 output; resident across the k (reduction) axis, so it
    #         doubles as the accumulator (no separate VMEM scratch needed).
    k = pl.program_id(2)

    @pl.when(k == 0)
    def _():
        o_ref[...] = jnp.zeros_like(o_ref)

    # Contract the word (last) dims of both operands: x @ w.T, f32 accumulation.
    o_ref[...] += jax.lax.dot_general(
        x_ref[...],
        w_ref[...],
        dimension_numbers=(((1,), (1,)), ((), ())),
        preferred_element_type=jnp.float32,
    )

    @pl.when(k == pl.num_programs(2) - 1)
    def _():
        o_ref[...] = jax.nn.sigmoid(o_ref[...])


def lr_forward(
    x,
    w_fc,
    *,
    compute_dtype=jnp.bfloat16,
    tb_cap=256,
    tn_cap=2048,
    tk_cap=2048,
    vmem_budget_bytes=24 * 1024 * 1024,
):
    """LR.forward baseline path: probs = sigmoid(x @ w_fc.T)  (Linear, bias=False).

    x    : (B, num_words)            float
    w_fc : (num_codes, num_words)    float  (PyTorch nn.Linear weight layout)
    returns (B, num_codes) float32 probabilities.
    """
    B, K = x.shape
    C, K2 = w_fc.shape
    assert K == K2, "w_fc in_features must match x's num_words"

    in_bytes = jnp.dtype(compute_dtype).itemsize

    # ---- tiling ---------------------------------------------------------
    # batch -> multiple of 8 (sublane-dense); words/codes -> multiple of 128
    # (lane-dense loads/stores, unmasked vst).
    Bp = _round_up(max(B, 8), 8)
    tb = Bp if Bp <= tb_cap else tb_cap
    Bp = _round_up(Bp, tb)

    Kp = _round_up(K, 128)
    Cp = _round_up(C, 128)
    tk = _largest_divisor_tile(Kp, tk_cap, 128)
    tn = _largest_divisor_tile(Cp, tn_cap, 128)

    def vmem_estimate(tb_, tk_, tn_):
        # double-buffered bf16 input tiles + (possibly double-buffered) f32 output.
        return 2 * (tb_ * tk_ + tn_ * tk_) * in_bytes + 2 * tb_ * tn_ * 4

    while vmem_estimate(tb, tk, tn) > vmem_budget_bytes and tn > 128:
        tn = _largest_divisor_tile(Cp, tn - 128, 128)
    while vmem_estimate(tb, tk, tn) > vmem_budget_bytes and tk > 128:
        tk = _largest_divisor_tile(Kp, tk - 128, 128)

    # ---- cast + pad only when needed (no weight transpose) ---------------
    x_c = x.astype(compute_dtype)
    if (Bp, Kp) != (B, K):
        x_c = jnp.pad(x_c, ((0, Bp - B), (0, Kp - K)))
    w_c = w_fc.astype(compute_dtype)
    if (Cp, Kp) != (C, K):
        w_c = jnp.pad(w_c, ((0, Cp - C), (0, Kp - K)))

    grid = (Bp // tb, Cp // tn, Kp // tk)

    cost = pl.CostEstimate(
        flops=2 * Bp * Kp * Cp,
        transcendentals=Bp * Cp,
        # x read once, W re-streamed once per batch tile, output written once.
        bytes_accessed=(Bp * Kp + (Bp // tb) * Cp * Kp) * in_bytes + Bp * Cp * 4,
    )

    out = pl.pallas_call(
        lr_matmul_sigmoid_kernel,
        out_shape=jax.ShapeDtypeStruct((Bp, Cp), jnp.float32),
        grid_spec=pltpu.PrefetchScalarGridSpec(
            num_scalar_prefetch=0,
            grid=grid,
            in_specs=[
                pl.BlockSpec((tb, tk), lambda i, j, k: (i, k)),
                pl.BlockSpec((tn, tk), lambda i, j, k: (j, k)),
            ],
            out_specs=pl.BlockSpec((tb, tn), lambda i, j, k: (i, j)),
        ),
        compiler_params=pltpu.CompilerParams(
            # batch / code tiles are independent (megacore-shardable);
            # the num_words reduction axis carries the accumulator -> arbitrary.
            dimension_semantics=("parallel", "parallel", "arbitrary"),
            vmem_limit_bytes=48 * 1024 * 1024,
        ),
        cost_estimate=cost,
    )(x_c, w_c)

    if (Bp, Cp) != (B, C):
        out = out[:B, :C]
    return out


def lr_forward_reference_f32(x, w_fc):
    """Pure-JAX f32 reference matching the PyTorch LR.forward baseline path."""
    return jax.nn.sigmoid(
        x.astype(jnp.float32) @ jnp.transpose(w_fc).astype(jnp.float32)
    )


def lr_forward_reference_bf16(x, w_fc):
    """Reference with the same bf16 MXU input precision as the kernel."""
    return jax.nn.sigmoid(
        jnp.dot(
            x.astype(jnp.bfloat16),
            jnp.transpose(w_fc).astype(jnp.bfloat16),
            preferred_element_type=jnp.float32,
        )
    )


if __name__ == "__main__":
    # Small shapes consistent with LR: x is (batch, num_words), fc maps
    # num_words -> num_codes with no bias.
    B = 2
    num_words = 300     # pads to 384
    num_codes = 50      # pads to 128 -> lane-dense output slab

    key = jax.random.PRNGKey(0)
    kx, kw = jax.random.split(key)
    x = jax.random.normal(kx, (B, num_words), jnp.float32)
    w_fc = 0.1 * jax.random.normal(kw, (num_codes, num_words), jnp.float32)

    probs = jax.block_until_ready(lr_forward(x, w_fc))
    assert probs.shape == (B, num_codes)

    ref_bf16 = jax.block_until_ready(lr_forward_reference_bf16(x, w_fc))
    ref_f32 = jax.block_until_ready(lr_forward_reference_f32(x, w_fc))

    # Tight check vs. a bf16-input reference (same MXU precision)...
    np.testing.assert_allclose(np.asarray(probs), np.asarray(ref_bf16), rtol=1e-3, atol=1e-3)
    # ...and a loose check vs. the exact f32 PyTorch-equivalent forward.
    np.testing.assert_allclose(np.asarray(probs), np.asarray(ref_f32), rtol=5e-2, atol=5e-3)

    # Also exercise the multi-step reduction/accumulation path (3 k-steps).
    probs_multi = jax.block_until_ready(lr_forward(x, w_fc, tk_cap=128, tn_cap=128))
    np.testing.assert_allclose(
        np.asarray(probs_multi), np.asarray(ref_bf16), rtol=1e-3, atol=1e-3
    )

    print("KERNEL_OK")
</pallas_src>

<mosaic_0001>
module attributes {stable_mosaic.version = 11 : i64} {
  func.func @lr_matmul_sigmoid_kernel(%arg0: i32, %arg1: i32, %arg2: i32, %arg3: memref<8x384xbf16, #tpu.memory_space<vmem>>, %arg4: memref<128x384xbf16, #tpu.memory_space<vmem>>, %arg5: memref<8x128xf32, #tpu.memory_space<vmem>>) attributes {dimension_semantics = [#tpu.dimension_semantics<parallel>, #tpu.dimension_semantics<parallel>, #tpu.dimension_semantics<arbitrary>], iteration_bounds = array<i64: 1, 1, 1>, scalar_prefetch = 0 : i64, scratch_operands = 0 : i64, tpu.core_type = #tpu.core_type<tc>, window_params = [{transform_indices = @transform_0, window_bounds = array<i64: 8, 384>}, {transform_indices = @transform_1, window_bounds = array<i64: 128, 384>}, {transform_indices = @transform_2, window_bounds = array<i64: 8, 128>}]} {
    %c0_i32 = arith.constant 0 : i32
    %0 = arith.cmpi eq, %arg2, %c0_i32 : i32
    %1 = arith.extui %0 : i1 to i32
    %c0_i32_0 = arith.constant 0 : i32
    %2 = arith.cmpi ne, %1, %c0_i32_0 : i32
    scf.if %2 {
      %cst_10 = arith.constant 0.000000e+00 : f32
      %12 = vector.broadcast %cst_10 : f32 to vector<8x128xf32>
      %c0_11 = arith.constant 0 : index
      %c0_12 = arith.constant 0 : index
      %13 = vector.load %arg5[%c0_11, %c0_12] : memref<8x128xf32, #tpu.memory_space<vmem>>, vector<8x128xf32>
      tpu.vector_store %arg5[%c0_11, %c0_12], %12 {strides = array<i32>} : memref<8x128xf32, #tpu.memory_space<vmem>>, vector<8x128xf32>,
    } else {
    }
    %c0 = arith.constant 0 : index
    %c0_1 = arith.constant 0 : index
    %3 = vector.load %arg5[%c0, %c0_1] : memref<8x128xf32, #tpu.memory_space<vmem>>, vector<8x128xf32>
    %c0_2 = arith.constant 0 : index
    %c0_3 = arith.constant 0 : index
    %4 = vector.load %arg3[%c0_2, %c0_3] : memref<8x384xbf16, #tpu.memory_space<vmem>>, vector<8x384xbf16>
    %c0_4 = arith.constant 0 : index
    %c0_5 = arith.constant 0 : index
    %5 = vector.load %arg4[%c0_4, %c0_5] : memref<128x384xbf16, #tpu.memory_space<vmem>>, vector<128x384xbf16>
    %cst = arith.constant dense<0.000000e+00> : vector<8x128xf32>
    %6 = tpu.matmul %4, %5, %cst {dimension_numbers = #tpu.dot_dimension_numbers<[1], [1], [0], [0], [0, 0, 1, 0], [], []>} : vector<8x384xbf16>, vector<128x384xbf16>, vector<8x128xf32> -> vector<8x128xf32>
    %7 = arith.addf %3, %6 : vector<8x128xf32>
    %c0_6 = arith.constant 0 : index
    %c0_7 = arith.constant 0 : index
    %8 = vector.load %arg5[%c0_6, %c0_7] : memref<8x128xf32, #tpu.memory_space<vmem>>, vector<8x128xf32>
    tpu.vector_store %arg5[%c0_6, %c0_7], %7 {strides = array<i32>} : memref<8x128xf32, #tpu.memory_space<vmem>>, vector<8x128xf32>,
    %c0_i32_8 = arith.constant 0 : i32
    %9 = arith.cmpi eq, %arg2, %c0_i32_8 : i32
    %10 = arith.extui %9 : i1 to i32
    %c0_i32_9 = arith.constant 0 : i32
    %11 = arith.cmpi ne, %10, %c0_i32_9 : i32
    scf.if %11 {
      %c0_10 = arith.constant 0 : index
      %c0_11 = arith.constant 0 : index
      %12 = vector.load %arg5[%c0_10, %c0_11] : memref<8x128xf32, #tpu.memory_space<vmem>>, vector<8x128xf32>
      %13 = arith.negf %12 : vector<8x128xf32>
      %14 = math.exp %13 : vector<8x128xf32>
      %cst_12 = arith.constant 1.000000e+00 : f32
      %15 = vector.broadcast %cst_12 : f32 to vector<8x128xf32>
      %16 = arith.addf %15, %14 : vector<8x128xf32>
      %17 = arith.divf %15, %16 : vector<8x128xf32>
      %c0_13 = arith.constant 0 : index
      %c0_14 = arith.constant 0 : index
      %18 = vector.load %arg5[%c0_13, %c0_14] : memref<8x128xf32, #tpu.memory_space<vmem>>, vector<8x128xf32>
      tpu.vector_store %arg5[%c0_13, %c0_14], %17 {strides = array<i32>} : memref<8x128xf32, #tpu.memory_space<vmem>>, vector<8x128xf32>,
    } else {
    }
    return
  }
  func.func @transform_0(%arg0: i32, %arg1: i32, %arg2: i32) -> (i32, i32) {
    %c0_i32 = arith.constant 0 : i32
    return %arg0, %arg2 : i32, i32
  }
  func.func @transform_1(%arg0: i32, %arg1: i32, %arg2: i32) -> (i32, i32) {
    %c0_i32 = arith.constant 0 : i32
    return %arg1, %arg2 : i32, i32
  }
  func.func @transform_2(%arg0: i32, %arg1: i32, %arg2: i32) -> (i32, i32) {
    %c0_i32 = arith.constant 0 : i32
    return %arg0, %arg1 : i32, i32
  }
}

</mosaic_0001>

<bundles_post_ra>
// kernel: tpu_custom_call.1
= control target key start
LH: loop header
LB: loop body
LE: loop exit
PB: predicated region body
PF: predicated region fallthrough
CT: control target
= control target key end

     0   :  { %7 = vsyncpa [#allocation3], 0  ;;  %s527_s0 = inlined_call_operand.hbm [shape: bf16[8,384], index: 0, kind: input, shape index: {}]   ;;  %s528_s1 = inlined_call_operand.hbm [shape: bf16[128,384], index: 1, kind: input, shape index: {}]   ;;  %s529_s2 = inlined_call_operand.hbm [shape: f32[8,128], index: 2, kind: output, shape index: {}]  }
   0x1   :  { %8 = vsyncpa [#allocation6], 0 }
   0x2   :  { %9 = vsyncpa [#allocation4], 0  ;;  %s496_s9 = smov [#allocation2]   ;;  %s497_s11 = smov [#allocation5]  }
   0x3   :  { %s16_s10 = sshll.u32 %s496_s9, 4  ;;  %s25_s12 = sshll.u32 %s497_s11, 4  ;;  %s17_s10 = int_to_ptr.vmem [resolvable:$true] %s16_s10  ;;  %s26_s12 = int_to_ptr.vmem [resolvable:$true] %s25_s12 }
   0x4   :  { %s438_s13 = scalar_lea.vmem %s17_s10, 192  ;;  %p443_p1 = scmp.lt.s32.totalorder %s17_s10, %s17_s10 }
   0x5   :  { %p439_p0 = scmp.ne.s32.totalorder %s17_s10, %s438_s13  ;;  %p444_p2 = scmp.lt.s32.totalorder %s438_s13, %s438_s13 }
   0x7   :  { %p445_p3 = por %p444_p2, %p443_p1 }
   0x9   :  { %p446_p4 = pnand %p445_p3, %p439_p0 }
   0xb   :  { %449 = shalt.err (!%p446_p4)
}
   0xc   :  { %19 = dma.hbm_to_vmem [thread:$0]  %s527_s0, 192, %s17_s10, [#allocation3]  }
   0xd   :  { %s458_s16 = scalar_lea.vmem %s26_s12, 3072  ;;  %p463_p6 = scmp.lt.s32.totalorder %s26_s12, %s26_s12 }
   0xe   :  { %p459_p5 = scmp.ne.s32.totalorder %s26_s12, %s458_s16  ;;  %p464_p7 = scmp.lt.s32.totalorder %s458_s16, %s458_s16 }
  0x10   :  { %p465_p8 = por %p464_p7, %p463_p6 }
  0x12   :  { %p466_p9 = pnand %p465_p8, %p459_p5 }
  0x14   :  { %469 = shalt.err (!%p466_p9)
}
  0x15   :  { %s498_s17 = smov 192   ;;  %s499_s18 = smov 12  }
  0x16   :  { %31 = dma.hbm_to_vmem [thread:$0]  %s528_s1, 3072, %s26_s12, [#allocation6], %s498_s17, %s498_s17, %s499_s18  }
  0x17   :  { %490 = dma.done.wait [#allocation3], 192  }
  0x18   :  { %491 = vsyncadd [#allocation3], 4294967104 }
  0x19   :  { %492 = dma.done.wait [#allocation6], 3072  }
  0x1a   :  { %493 = vsyncadd [#allocation6], 4294964224  ;;  %v500_v0 = vmov 0.0   ;;  %vm501_vm0 = vmmov 0   ;;  %v391_v1 = vld [vmem:[#allocation5 + $0xac] ss:$12 sps:$4 sm:$0xff]  }
  0x1b   :  { %364 = vmatprep.subr.bf16.mxu1 %v500_v0  ;;  %380 = vmatprep.mubr.msk.bf16.mxu1 %vm501_vm0, %v500_v0  ;;  %v393_v2 = vld [vmem:[#allocation5 + $0xb0] ss:$12 sps:$4 sm:$0xff]   ;;  %v394_v3 = vld [vmem:[#allocation5 + $0xa8] ss:$12 sps:$4 sm:$0xff]   ;;  %v397_v5 = vld [vmem:[#allocation5 + $0x98] ss:$12 sps:$4 sm:$0xff]  }
  0x1c   :  { %218 = vmatprep.subr.bf16.mxu0 %v391_v1  ;;  %365 = vmatpush3.bf16.xpose.msra.mxu1 %v393_v2  ;;  %v395_v4 = vld [vmem:[#allocation5 + $0x94] ss:$12 sps:$4 sm:$0xff]   ;;  %v398_v6 = vld [vmem:[#allocation5 + $0x90] ss:$12 sps:$4 sm:$0xff]   ;;  %v402_v9 = vld [vmem:[#allocation5 + $0x78] ss:$12 sps:$4 sm:$0xff]  }
  0x1d   :  { %219 = vmatpush1.bf16.xpose.msra.mxu0 %v394_v3  ;;  %366 = vmatprep.subr.bf16.mxu1 %v500_v0  ;;  %v399_v7 = vld [vmem:[#allocation5 + $0x7c] ss:$12 sps:$4 sm:$0xff]   ;;  %v401_v8 = vld [vmem:[#allocation5 + $0x80] ss:$12 sps:$4 sm:$0xff]   ;;  %v403_v10 = vld [vmem:[#allocation5 + $0x64] ss:$12 sps:$4 sm:$0xff]  }
  0x1e   :  { %220 = vmatprep.subr.bf16.mxu0 %v395_v4  ;;  %v45_v11 = vld [vmem:[#allocation2] sm:$0xff]  ;;  %v406_v14 = vld [vmem:[#allocation5 + $0x60] ss:$12 sps:$4 sm:$0xff]   ;;  %v409_v16 = vld [vmem:[#allocation5 + $0x50] ss:$12 sps:$4 sm:$0xff]   ;;  %s502_s0 = smov [#allocation7]  }
  0x1f   :  { %v328_v12 = vcombine.high %v45_v11, %v45_v11  ;;  %v405_v13 = vld [vmem:[#allocation5 + $0x68] ss:$12 sps:$4 sm:$0xff]   ;;  %v407_v15 = vld [vmem:[#allocation5 + $0x4c] ss:$12 sps:$4 sm:$0xff]   ;;  %v414_v20 = vld [vmem:[#allocation5 + $0x30] ss:$12 sps:$4 sm:$0xff]   ;;  %v327_v28 = vcombine.low %v45_v11, %v45_v11 }
  0x20   :  { %v410_v17 = vld [vmem:[#allocation5 + $0x48] ss:$12 sps:$4 sm:$0xff]   ;;  %v413_v19 = vld [vmem:[#allocation5 + $0x38] ss:$12 sps:$4 sm:$0xff]   ;;  %v417_v22 = vld [vmem:[#allocation5 + $0x20] ss:$12 sps:$4 sm:$0xff]  }
  0x21   :  { %250 = vmatprep.mubr.bf16.mxu0 %v328_v12  ;;  %v411_v18 = vld [vmem:[#allocation5 + $0x34] ss:$12 sps:$4 sm:$0xff]   ;;  %v415_v21 = vld [vmem:[#allocation5 + $0x1c] ss:$12 sps:$4 sm:$0xff]   ;;  %v418_v23 = vld [vmem:[#allocation5 + $0x18] ss:$12 sps:$4 sm:$0xff]  }
  0x22   :  { %v419_v24 = vld [vmem:[#allocation5 + $0x4] ss:$12 sps:$4 sm:$0xff]   ;;  %v421_v25 = vld [vmem:[#allocation5 + $0x8] ss:$12 sps:$4 sm:$0xff]   ;;  %v422_v26 = vld [vmem:[#allocation5] ss:$12 sps:$4 sm:$0xff]  }
  0x23   :  { %v425_v27 = vld [vmem:[#allocation2 + $0x8] ss:$0 sps:$4 sm:$0xff]   ;;  %s317_s1 = sshll.u32 %s502_s0, 4  ;;  %s318_s1 = int_to_ptr.vmem [resolvable:$true] %s317_s1 }
  0x24   :  { %367 = vmatpush3.bf16.xpose.msra.mxu1 %v397_v5  ;;  %s470_s21 = scalar_lea.vmem %s318_s1, 128  ;;  %p475_p11 = scmp.lt.s32.totalorder %s318_s1, %s318_s1 }
  0x25   :  { %221 = vmatpush1.bf16.xpose.msra.mxu0 %v398_v6  ;;  %368 = vmatprep.subr.bf16.mxu1 %v500_v0  ;;  %p471_p10 = scmp.ne.s32.totalorder %s318_s1, %s470_s21  ;;  %p476_p12 = scmp.lt.s32.totalorder %s470_s21, %s470_s21 }
  0x26   :  { %222 = vmatprep.subr.bf16.mxu0 %v399_v7 }
  0x27   :  { %p477_p13 = por %p476_p12, %p475_p11 }
  0x29   :  { %p478_p0 = pnand %p477_p13, %p471_p10 }
  0x2c   :  { %369 = vmatpush3.bf16.xpose.msra.mxu1 %v401_v8 }
  0x2d   :  { %223 = vmatpush1.bf16.xpose.msra.mxu0 %v402_v9  ;;  %370 = vmatprep.subr.bf16.mxu1 %v500_v0 }
  0x2e   :  { %224 = vmatprep.subr.bf16.mxu0 %v403_v10 }
  0x34   :  { %371 = vmatpush3.bf16.xpose.msra.mxu1 %v405_v13 }
  0x35   :  { %225 = vmatpush1.bf16.xpose.msra.mxu0 %v406_v14  ;;  %372 = vmatprep.subr.bf16.mxu1 %v500_v0 }
  0x36   :  { %226 = vmatprep.subr.bf16.mxu0 %v407_v15 }
  0x3c   :  { %373 = vmatpush3.bf16.xpose.msra.mxu1 %v409_v16 }
  0x3d   :  { %227 = vmatpush1.bf16.xpose.msra.mxu0 %v410_v17  ;;  %374 = vmatprep.subr.bf16.mxu1 %v500_v0 }
  0x3e   :  { %228 = vmatprep.subr.bf16.mxu0 %v411_v18 }
  0x44   :  { %375 = vmatpush3.bf16.xpose.msra.mxu1 %v413_v19 }
  0x45   :  { %229 = vmatpush1.bf16.xpose.msra.mxu0 %v414_v20  ;;  %376 = vmatprep.subr.bf16.mxu1 %v500_v0 }
  0x46   :  { %230 = vmatprep.subr.bf16.mxu0 %v415_v21 }
  0x4c   :  { %377 = vmatpush3.bf16.xpose.msra.mxu1 %v417_v22 }
  0x4d   :  { %231 = vmatpush1.bf16.xpose.msra.mxu0 %v418_v23  ;;  %378 = vmatprep.subr.bf16.mxu1 %v500_v0 }
  0x4e   :  { %232 = vmatprep.subr.bf16.mxu0 %v419_v24 }
  0x54   :  { %379 = vmatpush3.bf16.xpose.msra.mxu1 %v421_v25 }
  0x55   :  { %233 = vmatpush1.bf16.xpose.msra.mxu0 %v422_v26 }
  0x5b   :  { %381 = vmatmul.mubr.bf16.vlgmr.msra.gmra.mxu1 %v425_v27 }
  0x5c   :  { %251 = vmatmul.mubr.bf16.vlgmr.msra.gmra.mxu0 %v327_v28 }
 0x11b   :  { %v292_v29 = vpop.f32.mrf.mxu1 }
 0x11c   :  { %v252_v30 = vpop.f32.mrf.mxu0 }
 0x11d   :  { %v293_v31 = vadd.f32 %v292_v29, %v252_v30  ;;  %v382_v32 = vpop.f32.mrf.mxu1 }
 0x11e   :  { %v254_v33 = vpop.f32.mrf.mxu0 }
 0x11f   :  { %v295_v34 = vpop.f32.mrf.mxu1  ;;  %v354_v37 = vmul.f32 -1.442695, %v293_v31 }
 0x120   :  { %v255_v35 = vpop.f32.mrf.mxu0 }
 0x121   :  { %v383_v36 = vpop.f32.mrf.mxu1  ;;  %426 = vpow2.f32 %v354_v37 }
 0x122   :  { %v256_v38 = vpop.f32.mrf.mxu0 }
 0x12e   :  { %v427_v39 = vpop.eup %426 }
 0x12f   :  { %v307_v40 = vadd.f32 1.0, %v427_v39 }
 0x131   :  { %428 = vrcp.f32 %v307_v40 }
 0x13e   :  { %v429_v41 = vpop.eup %428 }
 0x13f   :  { %310 = vst [vmem:[#allocation7] sm:$0xff] %v429_v41 }
 0x140   :  { %481 = shalt.err (!%p478_p0)
}
 0x141   :  { %320 = dma.vmem_to_hbm [thread:$0]  %s318_s1, 128, %s529_s2, [#allocation4]  }
 0x142   :  { %494 = dma.done.wait [#allocation4], 128  }
 0x143   :  { %495 = vsyncadd [#allocation4], 4294967168 }
 0x144   :  { %324 = vsyncpa [#allocation3], 1 }
 0x145   :  { %325 = vsyncpa [#allocation6], 1 }
 0x146   :  { %326 = vsyncpa [#allocation4], 1 }

</bundles_post_ra>
